<compile_context>
chip_gen: v7x
topology: tpu7x:2x2x1
jax: 0.10.0
libtpu: 0.0.40
codegen_flags: <defaults>
</compile_context>

<pallas_src>
import functools
import math

import jax
import jax.numpy as jnp
from jax.experimental import pallas as pl
from jax.experimental.pallas import tpu as pltpu


def _spec_conv_kernel(x_ref, pat_ref, sel_ref, w_ref, b_ref, o_ref):
    # x_ref:   VMEM [tm_g, G*F]    G original rows packed per dense row (streamed)
    # pat_ref: VMEM [Wp,   G*F]    per-step scale pattern: theta-polynomial of the
    #                              batch's eigenvalues, replicated F times per lane
    # sel_ref: VMEM [tm_g, Wp]     0/1 row -> pattern-row selector (grid-invariant,
    #                              resident; constant index_map)
    # w_ref:   VMEM [G*F, G*R]     block-diagonal kron(I_G, W.T)      (resident)
    # b_ref:   VMEM [1,   G*R]     bias tiled G times                 (resident)
    # o_ref:   VMEM [tm_g, G*R]    lane-dense output tile
    #
    # Both dots use the default matmul precision: the previous revision of this
    # kernel routed the f32 `scale` through the same kind of 0/1 selection
    # matmul and passed a 1e-5 check on-device, so the default lowering keeps
    # f32 mantissa here; force jax.lax.Precision.HIGHEST if a platform's
    # default turns out looser.
    scale_exp = jnp.dot(sel_ref[...], pat_ref[...],
                        preferred_element_type=jnp.float32)      # [tm_g, G*F]
    scaled = x_ref[...] * scale_exp                              # VPU, narrow side
    acc = jnp.dot(scaled, w_ref[...],
                  preferred_element_type=jnp.float32)            # [tm_g, G*R]
    o_ref[...] = (acc + b_ref[...]).astype(o_ref.dtype)


def graph_batch_input_projection(x, Lambda, theta, weight, bias, *,
                                 target_rows=49152,
                                 vmem_budget_bytes=36 * 1024 * 1024):
    """x: [B, L, N, F] f32; Lambda: [B*N] f32; theta: [K]; weight: [R, F]; bias: [R]."""
    B, L, N, F = x.shape
    R = weight.shape[0]
    K = theta.shape[0]
    M = B * L * N
    dtype = x.dtype
    rows_per_batch = L * N

    # ---- packing factor G: make G*R a multiple of 128 lanes when possible ------
    G0 = 128 // math.gcd(R, 128)          # smallest G with (G*R) % 128 == 0
    G = math.gcd(G0, rows_per_batch)      # largest divisor of G0 that also divides
                                          # L*N, so dense rows never straddle a batch
    while G > 1 and G * max(F, R) > 2048:  # keep dense-row width sane for odd R
        G //= 2
    # TODO(synk): if G < G0 (e.g. odd L*N), the output block is narrower than 128
    # lanes and falls back to masked stores; padding N is not semantically safe here.

    GF, GR = G * F, G * R
    Lg_b = rows_per_batch // G            # dense rows per batch
    Mg = M // G                           # total dense rows
    P = N // math.gcd(N, G)               # within-batch period of the Lambda pattern
                                          # measured in dense rows

    # ---- exact f32 filter scale on the compact [B, N] Lambda (no L broadcast) ---
    lam = Lambda.reshape(B, N).astype(jnp.float32)
    scale_bn = jnp.zeros((B, N), jnp.float32) + theta[0]
    p = lam
    for it in range(1, K):
        scale_bn = scale_bn + theta[it] * p
        if it + 1 < K:
            p = p * lam

    # ---- row-tile selection with explicit lane-padded VMEM accounting ----------
    # A [tm_g, C] f32 block occupies tm_g * roundup(C,128) * 4 bytes in VMEM
    # ((8,128) tiling), so the 16-lane x block and the selector cost a full
    # 128-lane tile per row-group no matter how narrow they are logically.
    def _pad_lanes(c):
        return ((c + 127) // 128) * 128

    def _wp_for(tm_g):                     # selector / pattern width for a tile
        wp = (max(1, tm_g // Lg_b) * P) if tm_g >= Lg_b else P
        return ((wp + 7) // 8) * 8         # pattern rows padded to sublane multiple

    def _bytes_per_row(tm_g):
        wp_pad = _pad_lanes(_wp_for(tm_g))
        # x + out double-buffered, selector budgeted at 2 buffers, plus the
        # dot / elementwise temporaries the compiler materialises per block.
        return 4 * (2 * _pad_lanes(GF) + 2 * _pad_lanes(GR) + 2 * wp_pad
                    + 2 * _pad_lanes(GF) + 2 * _pad_lanes(GR))

    def _vmem_ok(tm_g):
        return tm_g * _bytes_per_row(tm_g) <= vmem_budget_bytes

    target_g = max(8, target_rows // G)

    cands = []
    for bb in range(1, B + 1):            # whole-batch-group tiles (always exact)
        if B % bb:
            continue
        t = bb * Lg_b
        if t > target_g:
            break
        if (t % 8 == 0 or t == Mg) and _vmem_ok(t):
            cands.append(t)
    if not cands and Lg_b % P == 0 and Lg_b >= 8:
        # sub-batch tiles: divisor of Lg_b, multiple of lcm(P, 8) so that tile
        # starts stay aligned with the Lambda period and the sublane grid.
        step = (P * 8) // math.gcd(P, 8)
        t = (min(target_g, Lg_b) // step) * step
        while t >= step:
            if Lg_b % t == 0 and _vmem_ok(t):
                cands.append(t)
                break
            t -= step
    if not cands:
        cands.append(Mg)                  # always-legal fallback: one step over all
        # TODO(synk): pathological shapes (huge, oddly sized per-batch row counts)
        # land here and may exceed the VMEM budget; needs a padded tiling path.

    tm_g = max(cands)
    # Give the two v7x TensorCores (and the DMA pipeline) >= 2 steps when the
    # problem is big enough for the split to matter; on single-TC parts extra
    # steps only add per-step overhead, so do not force more than that.
    if Mg // tm_g == 1 and Mg >= 2048:
        smaller = [t for t in cands if Mg // t >= 2]
        if smaller:
            tm_g = max(smaller)
    # v7x megacore: prefer an even number of grid steps when it costs <= 2x tile.
    if (Mg // tm_g) % 2 == 1 and Mg // tm_g > 1:
        even = [t for t in cands if (Mg // t) % 2 == 0 and 2 * t >= tm_g]
        if even:
            tm_g = max(even)

    nsteps = Mg // tm_g

    # ---- per-step scale pattern + grid-invariant selector -----------------------
    # pat_b[b, p, q] = scale(batch b, node (p*G + q) % N)
    node_idx = (jnp.arange(P)[:, None] * G + jnp.arange(G)[None, :]) % N   # [P, G]
    pat_b = scale_bn[:, node_idx]                                          # [B, P, G]
    if tm_g >= Lg_b:                      # tiles cover whole batches
        bb = tm_g // Lg_b
        Wp = bb * P
        pat_steps = pat_b.reshape(nsteps, Wp, G)
    else:                                  # several tiles per batch
        Wp = P
        pat_steps = jnp.repeat(pat_b, Lg_b // tm_g, axis=0)                # [steps, P, G]
    Wp_pad = ((Wp + 7) // 8) * 8
    pat_exp = jnp.repeat(pat_steps, F, axis=-1).astype(dtype)              # [steps, Wp, G*F]
    if Wp_pad != Wp:
        pat_exp = jnp.pad(pat_exp, ((0, 0), (0, Wp_pad - Wp), (0, 0)))
    pat_exp = pat_exp.reshape(nsteps * Wp_pad, GF)
    # Total pattern stream is <= |Lambda| per step-group -> negligible HBM traffic,
    # unlike the previous broadcast_to(Lambda, (B, L, N)) materialisation.

    # Selector: dense row g of a tile -> pattern row (local_batch * P + phase).
    g_idx = jnp.arange(tm_g)
    col = (g_idx // Lg_b) * P + (g_idx % Lg_b) % P
    sel = (col[:, None] == jnp.arange(Wp_pad)[None, :]).astype(dtype)      # [tm_g, Wp_pad]

    # ---- remaining operands ------------------------------------------------------
    x_dense = x.reshape(Mg, GF)            # row-major view, element order unchanged
    eye = jnp.eye(G, dtype=dtype)
    w_blk = jnp.kron(eye, weight.T.astype(dtype))                          # [G*F, G*R]
    b_dense = jnp.tile(bias.astype(dtype), (G,)).reshape(1, GR)
    # TODO(synk): emitting the output in bf16 would halve ~86% of the HBM traffic
    # (worth ~1.7x end-to-end) but changes output precision; kept f32.

    # VMEM accounting (lane-padded): ~5 KiB per dense row at GF=16, GR=128, so the
    # default 36 MiB budget caps the tile around 7-8K dense rows (~30K original
    # rows per step); the limit passed to Mosaic stays <= 52 MiB so it also fits
    # v7x's 64 MiB physical VMEM with headroom.
    vmem_est = tm_g * _bytes_per_row(tm_g) + (1 << 20)
    vmem_limit = int(min(max(int(vmem_est * 1.4), 24 << 20), 52 << 20))

    cost = pl.CostEstimate(
        flops=2 * Mg * (GF * GR + Wp_pad * GF),
        bytes_accessed=4 * (Mg * (GF + GR) + nsteps * Wp_pad * GF
                            + tm_g * Wp_pad + GF * GR + GR),
        transcendentals=0)

    out = pl.pallas_call(
        _spec_conv_kernel,
        out_shape=jax.ShapeDtypeStruct((Mg, GR), dtype),
        grid_spec=pltpu.PrefetchScalarGridSpec(
            num_scalar_prefetch=0,
            grid=(nsteps,),
            in_specs=[
                pl.BlockSpec((tm_g, GF), lambda i: (i, 0)),       # x tile (streamed)
                pl.BlockSpec((Wp_pad, GF), lambda i: (i, 0)),     # scale pattern (tiny)
                pl.BlockSpec((tm_g, Wp_pad), lambda i: (0, 0)),   # selector (resident)
                pl.BlockSpec((GF, GR), lambda i: (0, 0)),         # kron(I_G, W.T)
                pl.BlockSpec((1, GR), lambda i: (0, 0)),          # bias (resident)
            ],
            out_specs=pl.BlockSpec((tm_g, GR), lambda i: (i, 0)), # lane-dense output
        ),
        compiler_params=pltpu.CompilerParams(
            dimension_semantics=("parallel",),
            vmem_limit_bytes=vmem_limit),
        cost_estimate=cost,
    )(x_dense, pat_exp, sel, w_blk, b_dense)
    # TODO(synk): if a trace ever shows the narrow x-input DMA exposed, add
    # pipeline_mode=pl.Buffered(3) on the x BlockSpec.

    # out[g, q*R + r] == y[G*g + q, r]  ->  row-major reshape back to [B, L, N, R].
    return out.reshape(B, L, N, R)


def _reference(x, Lambda, theta, weight, bias):
    B, L, N, F = x.shape
    K = theta.shape[0]
    lam = jnp.broadcast_to(Lambda.reshape(B, 1, N, 1), (B, L, N, 1))
    out = theta[0] * x
    for it in range(1, K):
        out = out + theta[it] * (lam ** it) * x
    return out @ weight.T + bias


if __name__ == "__main__":
    # Small shapes consistent with the module: B=2, seq L=8, num_nodes N=16,
    # feat_dim F=4, residual_channels R=32, K=2.
    B, L, N, F, R, K = 2, 8, 16, 4, 32, 2

    key = jax.random.PRNGKey(0)
    kx, kl, kw, kb = jax.random.split(key, 4)

    x = jax.random.normal(kx, (B, L, N, F), dtype=jnp.float32)
    Lambda = jax.random.uniform(kl, (B * N,), dtype=jnp.float32, minval=0.0, maxval=2.0)

    # Deterministic synthetic parameters (SpecConv: theta [K], Linear: [R, F] + [R]).
    theta = jnp.linspace(1.0, 0.5, K, dtype=jnp.float32)
    bound = 1.0 / (F ** 0.5)
    weight = jax.random.uniform(kw, (R, F), dtype=jnp.float32, minval=-bound, maxval=bound)
    bias = jax.random.uniform(kb, (R,), dtype=jnp.float32, minval=-bound, maxval=bound)
    # TODO(synk): input_gcn (ChebConv) and input_linear params are unused in forward; omitted.

    y = graph_batch_input_projection(x, Lambda, theta, weight, bias)
    y = jax.block_until_ready(y)

    y_ref = _reference(x, Lambda, theta, weight, bias)
    assert y.shape == (B, L, N, R)
    assert jnp.allclose(y, y_ref, atol=1e-5, rtol=1e-5)

    print("KERNEL_OK")
</pallas_src>

<mosaic_0001>
module attributes {stable_mosaic.version = 11 : i64} {
  func.func @_spec_conv_kernel(%arg0: i32, %arg1: memref<64x16xf32, #tpu.memory_space<vmem>>, %arg2: memref<8x16xf32, #tpu.memory_space<vmem>>, %arg3: memref<64x8xf32, #tpu.memory_space<vmem>>, %arg4: memref<16x128xf32, #tpu.memory_space<vmem>>, %arg5: memref<1x128xf32, #tpu.memory_space<vmem>>, %arg6: memref<64x128xf32, #tpu.memory_space<vmem>>) attributes {dimension_semantics = [#tpu.dimension_semantics<parallel>], iteration_bounds = array<i64: 1>, scalar_prefetch = 0 : i64, scratch_operands = 0 : i64, tpu.core_type = #tpu.core_type<tc>, window_params = [{transform_indices = @transform_0, window_bounds = array<i64: 64, 16>}, {transform_indices = @transform_1, window_bounds = array<i64: 8, 16>}, {pipeline_mode = #tpu.pipeline_mode<synchronous>, transform_indices = @transform_2, window_bounds = array<i64: 64, 8>}, {pipeline_mode = #tpu.pipeline_mode<synchronous>, transform_indices = @transform_3, window_bounds = array<i64: 16, 128>}, {pipeline_mode = #tpu.pipeline_mode<synchronous>, transform_indices = @transform_4, window_bounds = array<i64: 1, 128>}, {transform_indices = @transform_5, window_bounds = array<i64: 64, 128>}]} {
    %c0 = arith.constant 0 : index
    %c0_0 = arith.constant 0 : index
    %0 = vector.load %arg3[%c0, %c0_0] : memref<64x8xf32, #tpu.memory_space<vmem>>, vector<64x8xf32>
    %c0_1 = arith.constant 0 : index
    %c0_2 = arith.constant 0 : index
    %1 = vector.load %arg2[%c0_1, %c0_2] : memref<8x16xf32, #tpu.memory_space<vmem>>, vector<8x16xf32>
    %cst = arith.constant dense<0.000000e+00> : vector<64x16xf32>
    %2 = tpu.matmul %0, %1, %cst {dimension_numbers = #tpu.dot_dimension_numbers<[1], [0], [0], [1], [0, 0, 1, 1], [], []>} : vector<64x8xf32>, vector<8x16xf32>, vector<64x16xf32> -> vector<64x16xf32>
    %c0_3 = arith.constant 0 : index
    %c0_4 = arith.constant 0 : index
    %3 = vector.load %arg1[%c0_3, %c0_4] : memref<64x16xf32, #tpu.memory_space<vmem>>, vector<64x16xf32>
    %4 = arith.mulf %3, %2 : vector<64x16xf32>
    %c0_5 = arith.constant 0 : index
    %c0_6 = arith.constant 0 : index
    %5 = vector.load %arg4[%c0_5, %c0_6] : memref<16x128xf32, #tpu.memory_space<vmem>>, vector<16x128xf32>
    %cst_7 = arith.constant dense<0.000000e+00> : vector<64x128xf32>
    %6 = tpu.matmul %4, %5, %cst_7 {dimension_numbers = #tpu.dot_dimension_numbers<[1], [0], [0], [1], [0, 0, 1, 1], [], []>} : vector<64x16xf32>, vector<16x128xf32>, vector<64x128xf32> -> vector<64x128xf32>
    %c0_8 = arith.constant 0 : index
    %c0_9 = arith.constant 0 : index
    %7 = vector.load %arg5[%c0_8, %c0_9] : memref<1x128xf32, #tpu.memory_space<vmem>>, vector<1x128xf32>
    %8 = vector.broadcast %7 : vector<1x128xf32> to vector<64x128xf32>
    %9 = arith.addf %6, %8 : vector<64x128xf32>
    %c0_10 = arith.constant 0 : index
    %c0_11 = arith.constant 0 : index
    %10 = vector.load %arg6[%c0_10, %c0_11] : memref<64x128xf32, #tpu.memory_space<vmem>>, vector<64x128xf32>
    tpu.vector_store %arg6[%c0_10, %c0_11], %9 {strides = array<i32>} : memref<64x128xf32, #tpu.memory_space<vmem>>, vector<64x128xf32>,
    return
  }
  func.func @transform_0(%arg0: i32) -> (i32, i32) {
    %c0_i32 = arith.constant 0 : i32
    %c0_i32_0 = arith.constant 0 : i32
    return %arg0, %c0_i32 : i32, i32
  }
  func.func @transform_1(%arg0: i32) -> (i32, i32) {
    %c0_i32 = arith.constant 0 : i32
    %c0_i32_0 = arith.constant 0 : i32
    return %arg0, %c0_i32 : i32, i32
  }
  func.func @transform_2(%arg0: i32) -> (i32, i32) {
    %c0_i32 = arith.constant 0 : i32
    %c0_i32_0 = arith.constant 0 : i32
    %c0_i32_1 = arith.constant 0 : i32
    return %c0_i32, %c0_i32_0 : i32, i32
  }
  func.func @transform_3(%arg0: i32) -> (i32, i32) {
    %c0_i32 = arith.constant 0 : i32
    %c0_i32_0 = arith.constant 0 : i32
    %c0_i32_1 = arith.constant 0 : i32
    return %c0_i32, %c0_i32_0 : i32, i32
  }
  func.func @transform_4(%arg0: i32) -> (i32, i32) {
    %c0_i32 = arith.constant 0 : i32
    %c0_i32_0 = arith.constant 0 : i32
    %c0_i32_1 = arith.constant 0 : i32
    return %c0_i32, %c0_i32_0 : i32, i32
  }
  func.func @transform_5(%arg0: i32) -> (i32, i32) {
    %c0_i32 = arith.constant 0 : i32
    %c0_i32_0 = arith.constant 0 : i32
    return %arg0, %c0_i32 : i32, i32
  }
}

</mosaic_0001>

<bundles_post_ra>
// kernel: tpu_custom_call.1
= control target key start
LH: loop header
LB: loop body
LE: loop exit
PB: predicated region body
PF: predicated region fallthrough
CT: control target
= control target key end

     0   :  { %vm30_vm0 = vcmask 64512   ;;  %s557_s0 = inlined_call_operand.vmem [shape: f32[64,16], index: 0, kind: input, shape index: {}]   ;;  %s558_s1 = inlined_call_operand.vmem [shape: f32[8,16], index: 1, kind: input, shape index: {}]   ;;  %s559_s2 = inlined_call_operand.vmem [shape: f32[64,8], index: 2, kind: input, shape index: {}]   ;;  %s560_s3 = inlined_call_operand.vmem [shape: f32[16,128], index: 3, kind: input, shape index: {}]   ;;  %s561_s4 = inlined_call_operand.vmem [shape: f32[1,128], index: 4, kind: input, shape index: {}]   ;;  %s562_s5 = inlined_call_operand.hbm [shape: f32[64,128], index: 5, kind: output, shape index: {}]  }
   0x1   :  { %v29_v0 = vld [vmem:[%s558_s1] sm:$0xff]  ;;  %v22_v2 = vld [vmem:[%s559_s2 + $0x8] sm:$0xff]  ;;  %v23_v3 = vld [vmem:[%s559_s2 + $0x10] sm:$0xff] }
   0x2   :  { %v21_v1 = vld [vmem:[%s559_s2] sm:$0xff]  ;;  %375 = vmatprep.subr.mxu0 %v29_v0 }
   0x3   :  { %377 = vmatprep.mubr.msk.f32.mxu0 %vm30_vm0, %v21_v1  ;;  %376 = vmatpush3.msra.mxu0 %v29_v0 }
   0x4   :  { %378 = vmatmul.mubr.msk.f32.vlgmr.msra.gmra.mrb[0].mxu0 %vm30_vm0, %v22_v2 }
   0x5   :  { %10 = vsyncpa [#allocation3], 0  ;;  %380 = vmatprep.mubr.msk.f32.mxu0 %vm30_vm0, %v23_v3  ;;  %v24_v4 = vld [vmem:[%s559_s2 + $0x18] sm:$0xff]  ;;  %v25_v5 = vld [vmem:[%s559_s2 + $0x20] sm:$0xff]  ;;  %vm185_vm1 = vcmask 130048  }
   0x6   :  { %v26_v6 = vld [vmem:[%s559_s2 + $0x28] sm:$0xff]  ;;  %v27_v7 = vld [vmem:[%s559_s2 + $0x30] sm:$0xff]  ;;  %v28_v8 = vld [vmem:[%s559_s2 + $0x38] sm:$0xff] }
   0x7   :  { %v176_v9 = vld [vmem:[%s560_s3] sm:$0xff]  ;;  %v177_v10 = vld [vmem:[%s560_s3 + $0x8] sm:$0xff]  ;;  %v162_v18 = vld [vmem:[%s557_s0 + $0x10] sm:$0xff] }
   0x8   :  { %381 = vmatmul.mubr.msk.f32.gmra.mrb[2].mxu0 %vm30_vm0, %v24_v4  ;;  %v405_v11 = vpack.c.bf16 %v177_v10, %v176_v9  ;;  %v160_v12 = vld [vmem:[%s557_s0] sm:$0xff]  ;;  %v161_v14 = vld [vmem:[%s557_s0 + $0x8] sm:$0xff]  ;;  %v163_v20 = vld [vmem:[%s557_s0 + $0x18] sm:$0xff] }
   0x9   :  { %383 = vmatprep.mubr.msk.f32.mxu0 %vm30_vm0, %v25_v5  ;;  %v164_v24 = vld [vmem:[%s557_s0 + $0x20] sm:$0xff]  ;;  %v165_v26 = vld [vmem:[%s557_s0 + $0x28] sm:$0xff]  ;;  %v166_v30 = vld [vmem:[%s557_s0 + $0x30] sm:$0xff] }
   0xa   :  { %406 = vmatprep.subr.bf16.mxu1 %v405_v11  ;;  %v167_v32 = vld [vmem:[%s557_s0 + $0x38] sm:$0xff]  ;;  %v347_v36 = vld [vmem:[%s561_s4] ss:$0 sm:$0xff]  ;;  %s436_s0 = smov [#allocation2]  }
   0xb   :  { %408 = vmatpush3.bf16.msra.mxu1 %v405_v11  ;;  %s328_s29 = sshll.u32 %s436_s0, 4  ;;  %s329_s29 = int_to_ptr.vmem [resolvable:$true] %s328_s29 }
   0xc   :  { %384 = vmatmul.mubr.msk.f32.gmra.mrb[4].mxu0 %vm30_vm0, %v26_v6  ;;  %s412_s4 = scalar_lea.vmem %s329_s29, 1024  ;;  %p417_p1 = scmp.lt.s32.totalorder %s329_s29, %s329_s29 }
   0xd   :  { %386 = vmatprep.mubr.msk.f32.mxu0 %vm30_vm0, %v27_v7  ;;  %p413_p0 = scmp.ne.s32.totalorder %s329_s29, %s412_s4  ;;  %p418_p2 = scmp.lt.s32.totalorder %s412_s4, %s412_s4 }
   0xf   :  { %p419_p3 = por %p418_p2, %p417_p1 }
  0x10   :  { %387 = vmatmul.mubr.msk.f32.gmra.mrb[6].mxu0 %vm30_vm0, %v28_v8 }
  0x11   :  { %p420_p4 = pnand %p419_p3, %p413_p0 }
  0xd7   :  { %v379_v13 = vpop.f32.mrb[0].mxu0 }
  0xd8   :  { %v121_v15 = vpop.f32.mrb[1].mxu0  ;;  %v169_v17 = vmul.f32 %v379_v13, %v161_v14 }
  0xd9   :  { %v168_v16 = vmul.f32 %v160_v12, %v121_v15 }
  0xdb   :  { %v382_v19 = vpop.f32.mrb[2].mxu0  ;;  %393 = vmatprep.mubr.msk.f32.mxu1 %vm185_vm1, %v168_v16 }
  0xdc   :  { %v131_v21 = vpop.f32.mrb[3].mxu0  ;;  %394 = vmatmul.mubr.msk.f32.vlgmr.msra.gmra.mrb[0].mxu1 %vm185_vm1, %v169_v17  ;;  %v171_v23 = vmul.f32 %v382_v19, %v163_v20 }
  0xdd   :  { %v170_v22 = vmul.f32 %v162_v18, %v131_v21 }
  0xdf   :  { %v385_v25 = vpop.f32.mrb[4].mxu0  ;;  %396 = vmatprep.mubr.msk.f32.mxu1 %vm185_vm1, %v170_v22 }
  0xe0   :  { %v141_v27 = vpop.f32.mrb[5].mxu0  ;;  %397 = vmatmul.mubr.msk.f32.gmra.mrb[2].mxu1 %vm185_vm1, %v171_v23  ;;  %v173_v29 = vmul.f32 %v385_v25, %v165_v26 }
  0xe1   :  { %v172_v28 = vmul.f32 %v164_v24, %v141_v27 }
  0xe3   :  { %v388_v31 = vpop.f32.mrb[6].mxu0  ;;  %399 = vmatprep.mubr.msk.f32.mxu1 %vm185_vm1, %v172_v28 }
  0xe4   :  { %v151_v33 = vpop.f32.mrb[7].mxu0  ;;  %400 = vmatmul.mubr.msk.f32.gmra.mrb[4].mxu1 %vm185_vm1, %v173_v29  ;;  %v175_v35 = vmul.f32 %v388_v31, %v167_v32 }
  0xe5   :  { %v174_v34 = vmul.f32 %v166_v30, %v151_v33 }
  0xe7   :  { %402 = vmatprep.mubr.msk.f32.mxu1 %vm185_vm1, %v174_v34 }
  0xe8   :  { %403 = vmatmul.mubr.msk.f32.gmra.mrb[6].mxu1 %vm185_vm1, %v175_v35 }
 0x1af   :  { %v395_v37 = vpop.f32.mrb[0].mxu1 }
 0x1b0   :  { %v282_v38 = vadd.f32 %v395_v37, %v347_v36  ;;  %v276_v39 = vpop.f32.mrb[1].mxu1 }
 0x1b1   :  { %v277_v40 = vadd.f32 %v347_v36, %v276_v39 }
 0x1b2   :  { %316 = vst [vmem:[#allocation2 + $0x8] sm:$0xff] %v282_v38 }
 0x1b3   :  { %315 = vst [vmem:[#allocation2] sm:$0xff] %v277_v40  ;;  %v398_v41 = vpop.f32.mrb[2].mxu1 }
 0x1b4   :  { %v292_v42 = vadd.f32 %v398_v41, %v347_v36  ;;  %v286_v43 = vpop.f32.mrb[3].mxu1 }
 0x1b5   :  { %v287_v44 = vadd.f32 %v347_v36, %v286_v43 }
 0x1b6   :  { %318 = vst [vmem:[#allocation2 + $0x18] sm:$0xff] %v292_v42 }
 0x1b7   :  { %317 = vst [vmem:[#allocation2 + $0x10] sm:$0xff] %v287_v44  ;;  %v401_v45 = vpop.f32.mrb[4].mxu1 }
 0x1b8   :  { %v302_v46 = vadd.f32 %v401_v45, %v347_v36  ;;  %v296_v47 = vpop.f32.mrb[5].mxu1 }
 0x1b9   :  { %v297_v48 = vadd.f32 %v347_v36, %v296_v47 }
 0x1ba   :  { %320 = vst [vmem:[#allocation2 + $0x28] sm:$0xff] %v302_v46 }
 0x1bb   :  { %319 = vst [vmem:[#allocation2 + $0x20] sm:$0xff] %v297_v48  ;;  %v404_v49 = vpop.f32.mrb[6].mxu1 }
 0x1bc   :  { %v312_v50 = vadd.f32 %v404_v49, %v347_v36  ;;  %v306_v51 = vpop.f32.mrb[7].mxu1 }
 0x1bd   :  { %v307_v52 = vadd.f32 %v347_v36, %v306_v51 }
 0x1be   :  { %322 = vst [vmem:[#allocation2 + $0x38] sm:$0xff] %v312_v50 }
 0x1bf   :  { %321 = vst [vmem:[#allocation2 + $0x30] sm:$0xff] %v307_v52 }
 0x1c0   :  { %423 = shalt.err (!%p420_p4)
}
 0x1c1   :  { %s424_s7 = scalar_lea.hbm %s562_s5, 1024 }
 0x1c2   :  { %p425_p5 = scmp.ne.s32.totalorder %s562_s5, %s424_s7  ;;  %p428_p6 = scmp.lt.u32.totalorder %s424_s7, %s562_s5 }
 0x1c4   :  { %p430_p7 = pnand %p428_p6, %p425_p5 }
 0x1c6   :  { %433 = shalt.err (!%p430_p7)
}
 0x1c7   :  { %s437_s12 = smov 128   ;;  %s438_s13 = smov 8  }
 0x1c8   :  { %334 = dma.vmem_to_hbm [thread:$0]  %s329_s29, 1024, %s562_s5, [#allocation3], %s437_s12, %s437_s12, %s438_s13  }
 0x1c9   :  { %434 = dma.done.wait [#allocation3], 1024  }
 0x1ca   :  { %435 = vsyncadd [#allocation3], 4294966272 }
 0x1cb   :  { %338 = vsyncpa [#allocation3], 1 }

</bundles_post_ra>
